<compile_context>
chip_gen: v7x
topology: tpu7x:2x2x1
jax: 0.10.0
libtpu: 0.0.40
codegen_flags: <defaults>
</compile_context>

<pallas_src>
import functools

import jax
import jax.numpy as jnp
from jax.experimental import pallas as pl
from jax.experimental.pallas import tpu as pltpu

LANE = 128
SUBLANE = 8
EPSILON = 1e-6  # mirrors `epsilon` in the torch module


def _round_up(x, m):
    return ((x + m - 1) // m) * m


# ----------------------------------------------------------------------------
# Kernel
# ----------------------------------------------------------------------------
def _policy_head_kernel(x_ref, w1_ref, b1_ref, w2_ref, b2_ref, w3_ref, b3_ref,
                        logits_ref, probs_ref, logp_ref, greedy_ref,
                        *, num_actions):
    """Fused 3-layer MLP + categorical head on one (TB, *) batch tile.

    relu(x@W1+b1) -> relu(.@W2+b2) -> logits = .@W3+b3
    probs   = softmax(logits[:, :num_actions])
    logp    = log(probs + (probs == 0) * eps)    (torch convention)
    greedy  = argmax(logits[:, :num_actions])
    Padded action lanes (>= num_actions) are masked so they never contribute.
    """
    x = x_ref[...]

    h1 = jnp.dot(x, w1_ref[...], preferred_element_type=jnp.float32) + b1_ref[...]
    h1 = jnp.maximum(h1, 0.0)

    h2 = jnp.dot(h1, w2_ref[...], preferred_element_type=jnp.float32) + b2_ref[...]
    h2 = jnp.maximum(h2, 0.0)

    logits = jnp.dot(h2, w3_ref[...], preferred_element_type=jnp.float32) + b3_ref[...]
    logits_ref[...] = logits

    # Mask the padded action lanes.
    tb, a_pad = logits.shape
    lane = jax.lax.broadcasted_iota(jnp.int32, (tb, a_pad), 1)
    valid = lane < num_actions
    masked = jnp.where(valid, logits, jnp.float32(-1e30))

    # Numerically stable softmax over the valid lanes (exp -> EUP slot).
    m = jnp.max(masked, axis=-1, keepdims=True)
    e = jnp.where(valid, jnp.exp(masked - m), 0.0)
    s = jnp.sum(e, axis=-1, keepdims=True)
    probs = e / s
    probs_ref[...] = probs

    # torch: z = (probs == 0).float() * eps; log(probs + z)
    logp_ref[...] = jnp.log(probs + jnp.where(probs == 0.0, jnp.float32(EPSILON), 0.0))

    # Greedy action = first lane attaining the max (cross-lane reduce on XLU).
    lane_f = lane.astype(jnp.float32)
    idx = jnp.min(jnp.where(masked == m, lane_f, jnp.float32(a_pad)),
                  axis=-1, keepdims=True)
    greedy_ref[...] = idx.astype(jnp.int32)

    # TODO(synk): in-kernel categorical sampling (pltpu.prng_seed +
    # prng_random_bits) for .sample(); the random draw is left to the caller.


# ----------------------------------------------------------------------------
# Wrapper
# ----------------------------------------------------------------------------
def _policy_call(state, padded_params, *, num_actions, block_b=256):
    B, num_inputs = state.shape
    w1, b1 = padded_params["w1"], padded_params["b1"]
    w2, b2 = padded_params["w2"], padded_params["b2"]
    w3, b3 = padded_params["w3"], padded_params["b3"]
    NI_pad, H_pad = w1.shape
    A_pad = w3.shape[1]

    # Pad batch so the grid divides evenly (zero rows are harmless).
    B8 = _round_up(max(B, 1), SUBLANE)
    TB = min(block_b, B8)
    B_pad = _round_up(B8, TB)
    x = jnp.pad(state, ((0, B_pad - B), (0, NI_pad - num_inputs)))

    grid = (B_pad // TB,)
    vmem = pltpu.MemorySpace.VMEM

    tile_spec = lambda shape: pl.BlockSpec(shape, lambda i: (i, 0), memory_space=vmem)
    const_spec = lambda shape: pl.BlockSpec(shape, lambda i: (0, 0), memory_space=vmem)

    flops = 2 * B_pad * (NI_pad * H_pad + H_pad * H_pad + H_pad * A_pad)
    transcendentals = 2 * B_pad * A_pad  # exp + log
    bytes_accessed = 4 * (
        B_pad * NI_pad
        + NI_pad * H_pad + H_pad
        + H_pad * H_pad + H_pad
        + H_pad * A_pad + A_pad
        + 3 * B_pad * A_pad + B_pad)

    kernel = functools.partial(_policy_head_kernel, num_actions=num_actions)

    logits_p, probs_p, logp_p, greedy_p = pl.pallas_call(
        kernel,
        grid=grid,
        in_specs=[
            tile_spec((TB, NI_pad)),
            const_spec((NI_pad, H_pad)), const_spec((1, H_pad)),
            const_spec((H_pad, H_pad)), const_spec((1, H_pad)),
            const_spec((H_pad, A_pad)), const_spec((1, A_pad)),
        ],
        out_specs=(
            tile_spec((TB, A_pad)),
            tile_spec((TB, A_pad)),
            tile_spec((TB, A_pad)),
            pl.BlockSpec((TB, 1), lambda i: (i, 0), memory_space=vmem),
        ),
        out_shape=(
            jax.ShapeDtypeStruct((B_pad, A_pad), jnp.float32),
            jax.ShapeDtypeStruct((B_pad, A_pad), jnp.float32),
            jax.ShapeDtypeStruct((B_pad, A_pad), jnp.float32),
            jax.ShapeDtypeStruct((B_pad, 1), jnp.int32),
        ),
        compiler_params=pltpu.CompilerParams(dimension_semantics=("parallel",)),
        cost_estimate=pl.CostEstimate(
            flops=flops, transcendentals=transcendentals,
            bytes_accessed=bytes_accessed),
    )(x, w1, b1, w2, b2, w3, b3)

    return (logits_p[:B, :num_actions],
            probs_p[:B, :num_actions],
            logp_p[:B, :num_actions],
            greedy_p[:B, :])


def categorical_policy_forward(state, padded_params, *, num_actions, block_b=256):
    """forward(state) -> logits, matching the torch module's forward()."""
    logits, _, _, _ = _policy_call(state, padded_params,
                                   num_actions=num_actions, block_b=block_b)
    return logits


def categorical_policy_head(state, padded_params, *, num_actions, block_b=256):
    """Fused head: (logits, action_probs, log_action_probs, greedy_actions)."""
    return _policy_call(state, padded_params,
                        num_actions=num_actions, block_b=block_b)


# ----------------------------------------------------------------------------
# Params (logical shapes mirror torch; padded copies feed the kernel)
# ----------------------------------------------------------------------------
def init_params(key, num_inputs, num_actions, hidden_dim):
    """He (kaiming-normal) style init, mirroring he_weights_init_.

    Weights are stored transposed relative to torch nn.Linear ((in, out) here)
    so the kernel does x @ W directly. Biases are (1, out) rows.
    """
    k1, k2, k3 = jax.random.split(key, 3)

    def he(k, fan_in, shape):
        return (jax.random.normal(k, shape, jnp.float32)
                * jnp.sqrt(2.0 / fan_in)).astype(jnp.float32)

    return {
        "w1": he(k1, num_inputs, (num_inputs, hidden_dim)),
        "b1": jnp.zeros((1, hidden_dim), jnp.float32),
        "w2": he(k2, hidden_dim, (hidden_dim, hidden_dim)),
        "b2": jnp.zeros((1, hidden_dim), jnp.float32),
        "w3": he(k3, hidden_dim, (hidden_dim, num_actions)),
        "b3": jnp.zeros((1, num_actions), jnp.float32),
    }


def pad_params(params, num_inputs, num_actions, hidden_dim):
    """One-time zero-pad of all feature dims to multiples of 128 (lane-dense)."""
    NI_pad = _round_up(num_inputs, LANE)
    H_pad = _round_up(hidden_dim, LANE)
    A_pad = _round_up(num_actions, LANE)

    def pad2(a, rows, cols):
        return jnp.pad(a, ((0, rows - a.shape[0]), (0, cols - a.shape[1])))

    return {
        "w1": pad2(params["w1"], NI_pad, H_pad), "b1": pad2(params["b1"], 1, H_pad),
        "w2": pad2(params["w2"], H_pad, H_pad), "b2": pad2(params["b2"], 1, H_pad),
        "w3": pad2(params["w3"], H_pad, A_pad), "b3": pad2(params["b3"], 1, A_pad),
    }


# ----------------------------------------------------------------------------
# Reference (pure JAX) and self-test
# ----------------------------------------------------------------------------
def _reference_all(state, params):
    h1 = jnp.maximum(state @ params["w1"] + params["b1"], 0.0)
    h2 = jnp.maximum(h1 @ params["w2"] + params["b2"], 0.0)
    logits = h2 @ params["w3"] + params["b3"]
    probs = jax.nn.softmax(logits, axis=-1)
    logp = jnp.log(probs + jnp.where(probs == 0.0, EPSILON, 0.0))
    greedy = jnp.argmax(logits, axis=-1, keepdims=True).astype(jnp.int32)
    return logits, probs, logp, greedy


if __name__ == "__main__":
    num_inputs, num_actions, hidden_dim = 16, 6, 32
    batch = 8

    key = jax.random.PRNGKey(0)
    pkey, skey = jax.random.split(key)

    params = init_params(pkey, num_inputs, num_actions, hidden_dim)
    padded = pad_params(params, num_inputs, num_actions, hidden_dim)
    state = jax.random.normal(skey, (batch, num_inputs), jnp.float32)

    # forward() — logits only.
    logits = categorical_policy_forward(state, padded, num_actions=num_actions)
    logits = jax.block_until_ready(logits)

    # Fused head (used by act()/sample()).
    logits2, probs, logp, greedy = categorical_policy_head(
        state, padded, num_actions=num_actions)
    jax.block_until_ready((logits2, probs, logp, greedy))

    ref_logits, ref_probs, ref_logp, ref_greedy = _reference_all(state, params)

    assert logits.shape == (batch, num_actions)
    assert jnp.allclose(logits, ref_logits, atol=1e-5, rtol=1e-5)
    assert jnp.allclose(logits2, ref_logits, atol=1e-5, rtol=1e-5)
    assert jnp.allclose(probs, ref_probs, atol=1e-5, rtol=1e-5)
    assert jnp.allclose(logp, ref_logp, atol=1e-4, rtol=1e-4)
    assert greedy.shape == (batch, 1)
    assert jnp.array_equal(greedy.astype(jnp.int32), ref_greedy)

    print("KERNEL_OK")
</pallas_src>

<mosaic_0001>
module attributes {stable_mosaic.version = 11 : i64} {
  func.func @_policy_head_kernel(%arg0: i32, %arg1: memref<8x128xf32, #tpu.memory_space<vmem>>, %arg2: memref<128x128xf32, #tpu.memory_space<vmem>>, %arg3: memref<1x128xf32, #tpu.memory_space<vmem>>, %arg4: memref<128x128xf32, #tpu.memory_space<vmem>>, %arg5: memref<1x128xf32, #tpu.memory_space<vmem>>, %arg6: memref<128x128xf32, #tpu.memory_space<vmem>>, %arg7: memref<1x128xf32, #tpu.memory_space<vmem>>, %arg8: memref<8x128xf32, #tpu.memory_space<vmem>>, %arg9: memref<8x128xf32, #tpu.memory_space<vmem>>, %arg10: memref<8x128xf32, #tpu.memory_space<vmem>>, %arg11: memref<8x1xi32, #tpu.memory_space<vmem>>) attributes {dimension_semantics = [#tpu.dimension_semantics<parallel>], iteration_bounds = array<i64: 1>, scalar_prefetch = 0 : i64, scratch_operands = 0 : i64, tpu.core_type = #tpu.core_type<tc>, window_params = [{transform_indices = @transform_0, window_bounds = array<i64: 8, 128>}, {pipeline_mode = #tpu.pipeline_mode<synchronous>, transform_indices = @transform_1, window_bounds = array<i64: 128, 128>}, {pipeline_mode = #tpu.pipeline_mode<synchronous>, transform_indices = @transform_2, window_bounds = array<i64: 1, 128>}, {pipeline_mode = #tpu.pipeline_mode<synchronous>, transform_indices = @transform_3, window_bounds = array<i64: 128, 128>}, {pipeline_mode = #tpu.pipeline_mode<synchronous>, transform_indices = @transform_4, window_bounds = array<i64: 1, 128>}, {pipeline_mode = #tpu.pipeline_mode<synchronous>, transform_indices = @transform_5, window_bounds = array<i64: 128, 128>}, {pipeline_mode = #tpu.pipeline_mode<synchronous>, transform_indices = @transform_6, window_bounds = array<i64: 1, 128>}, {transform_indices = @transform_7, window_bounds = array<i64: 8, 128>}, {transform_indices = @transform_8, window_bounds = array<i64: 8, 128>}, {transform_indices = @transform_9, window_bounds = array<i64: 8, 128>}, {transform_indices = @transform_10, window_bounds = array<i64: 8, 1>}]} {
    %c0 = arith.constant 0 : index
    %c0_0 = arith.constant 0 : index
    %0 = vector.load %arg1[%c0, %c0_0] : memref<8x128xf32, #tpu.memory_space<vmem>>, vector<8x128xf32>
    %c0_1 = arith.constant 0 : index
    %c0_2 = arith.constant 0 : index
    %1 = vector.load %arg2[%c0_1, %c0_2] : memref<128x128xf32, #tpu.memory_space<vmem>>, vector<128x128xf32>
    %cst = arith.constant dense<0.000000e+00> : vector<8x128xf32>
    %2 = tpu.matmul %0, %1, %cst {dimension_numbers = #tpu.dot_dimension_numbers<[1], [0], [0], [1], [0, 0, 1, 1], [], []>} : vector<8x128xf32>, vector<128x128xf32>, vector<8x128xf32> -> vector<8x128xf32>
    %c0_3 = arith.constant 0 : index
    %c0_4 = arith.constant 0 : index
    %3 = vector.load %arg3[%c0_3, %c0_4] : memref<1x128xf32, #tpu.memory_space<vmem>>, vector<1x128xf32>
    %4 = vector.broadcast %3 : vector<1x128xf32> to vector<8x128xf32>
    %5 = arith.addf %2, %4 : vector<8x128xf32>
    %cst_5 = arith.constant 0.000000e+00 : f32
    %6 = vector.broadcast %cst_5 : f32 to vector<8x128xf32>
    %7 = arith.maximumf %5, %6 : vector<8x128xf32>
    %c0_6 = arith.constant 0 : index
    %c0_7 = arith.constant 0 : index
    %8 = vector.load %arg4[%c0_6, %c0_7] : memref<128x128xf32, #tpu.memory_space<vmem>>, vector<128x128xf32>
    %cst_8 = arith.constant dense<0.000000e+00> : vector<8x128xf32>
    %9 = tpu.matmul %7, %8, %cst_8 {dimension_numbers = #tpu.dot_dimension_numbers<[1], [0], [0], [1], [0, 0, 1, 1], [], []>} : vector<8x128xf32>, vector<128x128xf32>, vector<8x128xf32> -> vector<8x128xf32>
    %c0_9 = arith.constant 0 : index
    %c0_10 = arith.constant 0 : index
    %10 = vector.load %arg5[%c0_9, %c0_10] : memref<1x128xf32, #tpu.memory_space<vmem>>, vector<1x128xf32>
    %11 = vector.broadcast %10 : vector<1x128xf32> to vector<8x128xf32>
    %12 = arith.addf %9, %11 : vector<8x128xf32>
    %cst_11 = arith.constant 0.000000e+00 : f32
    %13 = vector.broadcast %cst_11 : f32 to vector<8x128xf32>
    %14 = arith.maximumf %12, %13 : vector<8x128xf32>
    %c0_12 = arith.constant 0 : index
    %c0_13 = arith.constant 0 : index
    %15 = vector.load %arg6[%c0_12, %c0_13] : memref<128x128xf32, #tpu.memory_space<vmem>>, vector<128x128xf32>
    %cst_14 = arith.constant dense<0.000000e+00> : vector<8x128xf32>
    %16 = tpu.matmul %14, %15, %cst_14 {dimension_numbers = #tpu.dot_dimension_numbers<[1], [0], [0], [1], [0, 0, 1, 1], [], []>} : vector<8x128xf32>, vector<128x128xf32>, vector<8x128xf32> -> vector<8x128xf32>
    %c0_15 = arith.constant 0 : index
    %c0_16 = arith.constant 0 : index
    %17 = vector.load %arg7[%c0_15, %c0_16] : memref<1x128xf32, #tpu.memory_space<vmem>>, vector<1x128xf32>
    %18 = vector.broadcast %17 : vector<1x128xf32> to vector<8x128xf32>
    %19 = arith.addf %16, %18 : vector<8x128xf32>
    %c0_17 = arith.constant 0 : index
    %c0_18 = arith.constant 0 : index
    %20 = vector.load %arg8[%c0_17, %c0_18] : memref<8x128xf32, #tpu.memory_space<vmem>>, vector<8x128xf32>
    tpu.vector_store %arg8[%c0_17, %c0_18], %19 {strides = array<i32>} : memref<8x128xf32, #tpu.memory_space<vmem>>, vector<8x128xf32>,
    %21 = tpu.iota {dimensions = array<i32: 1>} : vector<8x128xi32>
    %c6_i32 = arith.constant 6 : i32
    %22 = vector.broadcast %c6_i32 : i32 to vector<8x128xi32>
    %23 = arith.cmpi slt, %21, %22 : vector<8x128xi32>
    %cst_19 = arith.constant -1.000000e+30 : f32
    %24 = vector.broadcast %cst_19 : f32 to vector<8x128xf32>
    %25 = arith.select %23, %19, %24 : vector<8x128xi1>, vector<8x128xf32>
    %cst_20 = arith.constant dense<0xFF800000> : vector<8xf32>
    %26 = vector.multi_reduction <maximumf>, %25, %cst_20 [1] : vector<8x128xf32> to vector<8xf32>
    %27 = vector.shape_cast %26 : vector<8xf32> to vector<8x1xf32>
    %28 = vector.broadcast %27 : vector<8x1xf32> to vector<8x128xf32>
    %29 = arith.subf %25, %28 : vector<8x128xf32>
    %30 = math.exp %29 : vector<8x128xf32>
    %cst_21 = arith.constant 0.000000e+00 : f32
    %31 = vector.broadcast %cst_21 : f32 to vector<8x128xf32>
    %32 = arith.select %23, %30, %31 : vector<8x128xi1>, vector<8x128xf32>
    %cst_22 = arith.constant dense<0.000000e+00> : vector<8xf32>
    %33 = vector.multi_reduction <add>, %32, %cst_22 [1] : vector<8x128xf32> to vector<8xf32>
    %34 = vector.shape_cast %33 : vector<8xf32> to vector<8x1xf32>
    %35 = vector.broadcast %34 : vector<8x1xf32> to vector<8x128xf32>
    %36 = arith.divf %32, %35 : vector<8x128xf32>
    %c0_23 = arith.constant 0 : index
    %c0_24 = arith.constant 0 : index
    %37 = vector.load %arg9[%c0_23, %c0_24] : memref<8x128xf32, #tpu.memory_space<vmem>>, vector<8x128xf32>
    tpu.vector_store %arg9[%c0_23, %c0_24], %36 {strides = array<i32>} : memref<8x128xf32, #tpu.memory_space<vmem>>, vector<8x128xf32>,
    %cst_25 = arith.constant 0.000000e+00 : f32
    %38 = vector.broadcast %cst_25 : f32 to vector<8x128xf32>
    %39 = arith.cmpf oeq, %36, %38 : vector<8x128xf32>
    %cst_26 = arith.constant 9.99999997E-7 : f32
    %cst_27 = arith.constant 0.000000e+00 : f32
    %40 = vector.broadcast %cst_26 : f32 to vector<8x128xf32>
    %41 = vector.broadcast %cst_27 : f32 to vector<8x128xf32>
    %42 = arith.select %39, %40, %41 : vector<8x128xi1>, vector<8x128xf32>
    %43 = arith.addf %36, %42 : vector<8x128xf32>
    %44 = math.log %43 : vector<8x128xf32>
    %c0_28 = arith.constant 0 : index
    %c0_29 = arith.constant 0 : index
    %45 = vector.load %arg10[%c0_28, %c0_29] : memref<8x128xf32, #tpu.memory_space<vmem>>, vector<8x128xf32>
    tpu.vector_store %arg10[%c0_28, %c0_29], %44 {strides = array<i32>} : memref<8x128xf32, #tpu.memory_space<vmem>>, vector<8x128xf32>,
    %46 = arith.sitofp %21 : vector<8x128xi32> to vector<8x128xf32>
    %47 = vector.broadcast %27 : vector<8x1xf32> to vector<8x128xf32>
    %48 = arith.cmpf oeq, %25, %47 : vector<8x128xf32>
    %cst_30 = arith.constant 1.280000e+02 : f32
    %49 = vector.broadcast %cst_30 : f32 to vector<8x128xf32>
    %50 = arith.select %48, %46, %49 : vector<8x128xi1>, vector<8x128xf32>
    %cst_31 = arith.constant dense<0x7F800000> : vector<8xf32>
    %51 = vector.multi_reduction <minimumf>, %50, %cst_31 [1] : vector<8x128xf32> to vector<8xf32>
    %52 = vector.shape_cast %51 : vector<8xf32> to vector<8x1xf32>
    %53 = arith.fptosi %52 : vector<8x1xf32> to vector<8x1xi32>
    %c0_32 = arith.constant 0 : index
    %c0_33 = arith.constant 0 : index
    %54 = vector.load %arg11[%c0_32, %c0_33] : memref<8x1xi32, #tpu.memory_space<vmem>>, vector<8x1xi32>
    tpu.vector_store %arg11[%c0_32, %c0_33], %53 {strides = array<i32>} : memref<8x1xi32, #tpu.memory_space<vmem>>, vector<8x1xi32>,
    return
  }
  func.func @transform_0(%arg0: i32) -> (i32, i32) {
    %c0_i32 = arith.constant 0 : i32
    %c0_i32_0 = arith.constant 0 : i32
    return %arg0, %c0_i32 : i32, i32
  }
  func.func @transform_1(%arg0: i32) -> (i32, i32) {
    %c0_i32 = arith.constant 0 : i32
    %c0_i32_0 = arith.constant 0 : i32
    %c0_i32_1 = arith.constant 0 : i32
    return %c0_i32, %c0_i32_0 : i32, i32
  }
  func.func @transform_2(%arg0: i32) -> (i32, i32) {
    %c0_i32 = arith.constant 0 : i32
    %c0_i32_0 = arith.constant 0 : i32
    %c0_i32_1 = arith.constant 0 : i32
    return %c0_i32, %c0_i32_0 : i32, i32
  }
  func.func @transform_3(%arg0: i32) -> (i32, i32) {
    %c0_i32 = arith.constant 0 : i32
    %c0_i32_0 = arith.constant 0 : i32
    %c0_i32_1 = arith.constant 0 : i32
    return %c0_i32, %c0_i32_0 : i32, i32
  }
  func.func @transform_4(%arg0: i32) -> (i32, i32) {
    %c0_i32 = arith.constant 0 : i32
    %c0_i32_0 = arith.constant 0 : i32
    %c0_i32_1 = arith.constant 0 : i32
    return %c0_i32, %c0_i32_0 : i32, i32
  }
  func.func @transform_5(%arg0: i32) -> (i32, i32) {
    %c0_i32 = arith.constant 0 : i32
    %c0_i32_0 = arith.constant 0 : i32
    %c0_i32_1 = arith.constant 0 : i32
    return %c0_i32, %c0_i32_0 : i32, i32
  }
  func.func @transform_6(%arg0: i32) -> (i32, i32) {
    %c0_i32 = arith.constant 0 : i32
    %c0_i32_0 = arith.constant 0 : i32
    %c0_i32_1 = arith.constant 0 : i32
    return %c0_i32, %c0_i32_0 : i32, i32
  }
  func.func @transform_7(%arg0: i32) -> (i32, i32) {
    %c0_i32 = arith.constant 0 : i32
    %c0_i32_0 = arith.constant 0 : i32
    return %arg0, %c0_i32 : i32, i32
  }
  func.func @transform_8(%arg0: i32) -> (i32, i32) {
    %c0_i32 = arith.constant 0 : i32
    %c0_i32_0 = arith.constant 0 : i32
    return %arg0, %c0_i32 : i32, i32
  }
  func.func @transform_9(%arg0: i32) -> (i32, i32) {
    %c0_i32 = arith.constant 0 : i32
    %c0_i32_0 = arith.constant 0 : i32
    return %arg0, %c0_i32 : i32, i32
  }
  func.func @transform_10(%arg0: i32) -> (i32, i32) {
    %c0_i32 = arith.constant 0 : i32
    %c0_i32_0 = arith.constant 0 : i32
    return %arg0, %c0_i32 : i32, i32
  }
}

</mosaic_0001>

<bundles_post_ra>
// kernel: tpu_custom_call.1
= control target key start
LH: loop header
LB: loop body
LE: loop exit
PB: predicated region body
PF: predicated region fallthrough
CT: control target
= control target key end

     0   :  { %16 = vsyncpa [#allocation3], 0  ;;  %s1063_s0 = inlined_call_operand.hbm [shape: f32[8,128], index: 0, kind: input, shape index: {}]   ;;  %s1064_s1 = inlined_call_operand.hbm [shape: f32[128,128], index: 1, kind: input, shape index: {}]   ;;  %s1065_s2 = inlined_call_operand.vmem [shape: f32[1,128], index: 2, kind: input, shape index: {}]   ;;  %s1066_s3 = inlined_call_operand.hbm [shape: f32[128,128], index: 3, kind: input, shape index: {}]   ;;  %s1067_s4 = inlined_call_operand.vmem [shape: f32[1,128], index: 4, kind: input, shape index: {}]   ;;  %s1068_s5 = inlined_call_operand.hbm [shape: f32[128,128], index: 5, kind: input, shape index: {}]   ;;  %s1069_s6 = inlined_call_operand.vmem [shape: f32[1,128], index: 6, kind: input, shape index: {}]   ;;  %s1070_s7 = inlined_call_operand.hbm [shape: f32[8,128], index: 7, kind: output, shape index: {0}]   ;;  %s1071_s8 = inlined_call_operand.hbm [shape: f32[8,128], index: 8, kind: output, shape index: {1}]   ;;  %s1072_s9 = inlined_call_operand.hbm [shape: f32[8,128], index: 9, kind: output, shape index: {2}]   ;;  %s1073_s10 = inlined_call_operand.vmem [shape: s32[8,1], index: 10, kind: output, shape index: {3}]  }
   0x1   :  { %17 = vsyncpa [#allocation6], 0 }
   0x2   :  { %18 = vsyncpa [#allocation9], 0 }
   0x3   :  { %19 = vsyncpa [#allocation4], 0 }
   0x4   :  { %20 = vsyncpa [#allocation12], 0  ;;  %s860_s13 = smov [#allocation5]   ;;  %s696_s17 = scalar_lea.hbm %s1064_s1, 2048 }
   0x5   :  { %s36_s14 = sshll.u32 %s860_s13, 4  ;;  %p697_p0 = scmp.ne.s32.totalorder %s1064_s1, %s696_s17  ;;  %s37_s14 = int_to_ptr.vmem [resolvable:$true] %s36_s14 }
   0x6   :  { %p700_p1 = scmp.lt.u32.totalorder %s696_s17, %s1064_s1 }
   0x8   :  { %p702_p2 = pnand %p700_p1, %p697_p0 }
   0xa   :  { %705 = shalt.err (!%p702_p2)
}
   0xb   :  { %s706_s22 = scalar_lea.vmem %s37_s14, 2048  ;;  %p711_p4 = scmp.lt.s32.totalorder %s37_s14, %s37_s14 }
   0xc   :  { %p707_p3 = scmp.ne.s32.totalorder %s37_s14, %s706_s22  ;;  %p712_p5 = scmp.lt.s32.totalorder %s706_s22, %s706_s22 }
   0xe   :  { %p713_p6 = por %p712_p5, %p711_p4 }
  0x10   :  { %p714_p7 = pnand %p713_p6, %p707_p3 }
  0x12   :  { %717 = shalt.err (!%p714_p7)
}
  0x13   :  { %s861_s23 = smov 128   ;;  %s862_s24 = smov 8  }
  0x14   :  { %42 = dma.hbm_to_vmem [thread:$0]  %s1064_s1, 2048, %s37_s14, [#allocation6], %s861_s23, %s861_s23, %s862_s24  }
  0x15   :  { %s863_s27 = smov [#allocation2]   ;;  %s864_s29 = smov [#allocation7]  }
  0x16   :  { %s27_s28 = sshll.u32 %s863_s27, 4  ;;  %s50_s30 = sshll.u32 %s864_s29, 4  ;;  %s28_s28 = int_to_ptr.vmem [resolvable:$true] %s27_s28  ;;  %s51_s30 = int_to_ptr.vmem [resolvable:$true] %s50_s30 }
  0x17   :  { %s718_s13 = scalar_lea.hbm %s1063_s0, 128 }
  0x18   :  { %p719_p8 = scmp.ne.s32.totalorder %s1063_s0, %s718_s13  ;;  %p722_p9 = scmp.lt.u32.totalorder %s718_s13, %s1063_s0 }
  0x1a   :  { %p724_p10 = pnand %p722_p9, %p719_p8 }
  0x1c   :  { %727 = shalt.err (!%p724_p10)
}
  0x1d   :  { %s728_s1 = scalar_lea.vmem %s28_s28, 128  ;;  %p733_p12 = scmp.lt.s32.totalorder %s28_s28, %s28_s28 }
  0x1e   :  { %p729_p11 = scmp.ne.s32.totalorder %s28_s28, %s728_s1  ;;  %p734_p13 = scmp.lt.s32.totalorder %s728_s1, %s728_s1 }
  0x20   :  { %p735_p0 = por %p734_p13, %p733_p12 }
  0x22   :  { %p736_p1 = pnand %p735_p0, %p729_p11 }
  0x24   :  { %739 = shalt.err (!%p736_p1)
}
  0x25   :  { %30 = dma.hbm_to_vmem [thread:$0]  %s1063_s0, 128, %s28_s28, [#allocation3]  }
  0x26   :  { %s740_s22 = scalar_lea.hbm %s1066_s3, 2048 }
  0x27   :  { %p741_p2 = scmp.ne.s32.totalorder %s1066_s3, %s740_s22  ;;  %p744_p3 = scmp.lt.u32.totalorder %s740_s22, %s1066_s3 }
  0x29   :  { %p746_p4 = pnand %p744_p3, %p741_p2 }
  0x2b   :  { %749 = shalt.err (!%p746_p4)
}
  0x2c   :  { %s750_s11 = scalar_lea.vmem %s51_s30, 2048  ;;  %p755_p6 = scmp.lt.s32.totalorder %s51_s30, %s51_s30 }
  0x2d   :  { %p751_p5 = scmp.ne.s32.totalorder %s51_s30, %s750_s11  ;;  %p756_p7 = scmp.lt.s32.totalorder %s750_s11, %s750_s11 }
  0x2f   :  { %p757_p8 = por %p756_p7, %p755_p6 }
  0x31   :  { %p758_p9 = pnand %p757_p8, %p751_p5 }
  0x33   :  { %761 = shalt.err (!%p758_p9)
}
  0x34   :  { %56 = dma.hbm_to_vmem [thread:$0]  %s1066_s3, 2048, %s51_s30, [#allocation6], %s861_s23, %s861_s23, %s862_s24  }
  0x35   :  { %s865_s12 = smov [#allocation8]   ;;  %s762_s17 = scalar_lea.hbm %s1068_s5, 2048 }
  0x36   :  { %s64_s13 = sshll.u32 %s865_s12, 4  ;;  %p763_p10 = scmp.ne.s32.totalorder %s1068_s5, %s762_s17  ;;  %s65_s13 = int_to_ptr.vmem [resolvable:$true] %s64_s13 }
  0x37   :  { %p766_p11 = scmp.lt.u32.totalorder %s762_s17, %s1068_s5 }
  0x39   :  { %p768_p12 = pnand %p766_p11, %p763_p10 }
  0x3b   :  { %771 = shalt.err (!%p768_p12)
}
  0x3c   :  { %s772_s20 = scalar_lea.vmem %s65_s13, 2048  ;;  %p777_p0 = scmp.lt.s32.totalorder %s65_s13, %s65_s13 }
  0x3d   :  { %p773_p13 = scmp.ne.s32.totalorder %s65_s13, %s772_s20  ;;  %p778_p1 = scmp.lt.s32.totalorder %s772_s20, %s772_s20 }
  0x3f   :  { %p779_p2 = por %p778_p1, %p777_p0 }
  0x41   :  { %p780_p3 = pnand %p779_p2, %p773_p13 }
  0x43   :  { %783 = shalt.err (!%p780_p3)
}
  0x44   :  { %70 = dma.hbm_to_vmem [thread:$0]  %s1068_s5, 2048, %s65_s13, [#allocation9], %s861_s23, %s861_s23, %s862_s24  }
  0x45   :  { %850 = dma.done.wait [#allocation3], 128  }
  0x46   :  { %851 = vsyncadd [#allocation3], 4294967168 }
  0x47   :  { %852 = dma.done.wait [#allocation6], 4096  }
  0x48   :  { %853 = vsyncadd [#allocation6], 4294963200 }
  0x49   :  { %854 = dma.done.wait [#allocation9], 2048  }
  0x4a   :  { %855 = vsyncadd [#allocation9], 4294965248  ;;  %v866_v0 = vmov 0.0|0.0   ;;  %vm867_vm0 = vmmov 0   ;;  %v868_v1 = vmov 0.0   ;;  %v86_v2 = vld [vmem:[#allocation5] sm:$0xff] }
  0x4b   :  { %604 = vmatprep.subr.bf16.mxu0 %v866_v0  ;;  %531 = vmatprep.mubr.msk.f32.mxu0 %vm867_vm0, %v868_v1  ;;  %v87_v3 = vld [vmem:[#allocation5 + $0x8] sm:$0xff]  ;;  %v88_v4 = vld [vmem:[#allocation5 + $0x10] sm:$0xff]  ;;  %v89_v6 = vld [vmem:[#allocation5 + $0x18] sm:$0xff] }
  0x4c   :  { %628 = vmatprep.subr.bf16.mxu1 %v866_v0  ;;  %566 = vmatprep.mubr.msk.f32.mxu1 %vm867_vm0, %v868_v1  ;;  %v605_v5 = vpack.c.bf16 %v87_v3, %v86_v2  ;;  %v608_v7 = vpack.c.bf16 %v89_v6, %v88_v4  ;;  %v90_v8 = vld [vmem:[#allocation5 + $0x20] sm:$0xff]  ;;  %v91_v9 = vld [vmem:[#allocation5 + $0x28] sm:$0xff]  ;;  %v182_v12 = vld [vmem:[#allocation7 + $0x10] sm:$0xff] }
  0x4d   :  { %v180_v10 = vld [vmem:[#allocation7] sm:$0xff]  ;;  %v181_v11 = vld [vmem:[#allocation7 + $0x8] sm:$0xff]  ;;  %v183_v13 = vld [vmem:[#allocation7 + $0x18] sm:$0xff]  ;;  %v611_v14 = vpack.c.bf16 %v91_v9, %v90_v8 }
  0x4e   :  { %606 = vmatpush3.bf16.msra.mxu0 %v605_v5  ;;  %v629_v15 = vpack.c.bf16 %v181_v11, %v180_v10  ;;  %v92_v16 = vld [vmem:[#allocation5 + $0x30] sm:$0xff]  ;;  %v93_v17 = vld [vmem:[#allocation5 + $0x38] sm:$0xff]  ;;  %v632_v18 = vpack.c.bf16 %v183_v13, %v182_v12  ;;  %v184_v19 = vld [vmem:[#allocation7 + $0x20] sm:$0xff] }
  0x4f   :  { %607 = vmatprep.subr.bf16.mxu0 %v866_v0  ;;  %v185_v20 = vld [vmem:[#allocation7 + $0x28] sm:$0xff]  ;;  %v614_v21 = vpack.c.bf16 %v93_v17, %v92_v16  ;;  %v94_v22 = vld [vmem:[#allocation5 + $0x40] sm:$0xff]  ;;  %v186_v25 = vld [vmem:[#allocation7 + $0x30] sm:$0xff] }
  0x50   :  { %630 = vmatpush3.bf16.msra.mxu1 %v629_v15  ;;  %v95_v23 = vld [vmem:[#allocation5 + $0x48] sm:$0xff]  ;;  %v635_v24 = vpack.c.bf16 %v185_v20, %v184_v19  ;;  %v187_v26 = vld [vmem:[#allocation7 + $0x38] sm:$0xff]  ;;  %v96_v28 = vld [vmem:[#allocation5 + $0x50] sm:$0xff] }
  0x51   :  { %631 = vmatprep.subr.bf16.mxu1 %v866_v0  ;;  %v617_v27 = vpack.c.bf16 %v95_v23, %v94_v22  ;;  %v97_v29 = vld [vmem:[#allocation5 + $0x58] sm:$0xff]  ;;  %v638_v30 = vpack.c.bf16 %v187_v26, %v186_v25  ;;  %v188_v31 = vld [vmem:[#allocation7 + $0x40] sm:$0xff]  ;;  %v189_v32 = vld [vmem:[#allocation7 + $0x48] sm:$0xff]  ;;  %v368_v22 = vlaneseq }
  0x52   :  { %609 = vmatpush3.bf16.msra.mxu0 %v608_v7  ;;  %v620_v33 = vpack.c.bf16 %v97_v29, %v96_v28  ;;  %v98_v34 = vld [vmem:[#allocation5 + $0x60] sm:$0xff]  ;;  %v99_v35 = vld [vmem:[#allocation5 + $0x68] sm:$0xff]  ;;  %v641_v36 = vpack.c.bf16 %v189_v32, %v188_v31  ;;  %v190_v37 = vld [vmem:[#allocation7 + $0x50] sm:$0xff] }
  0x53   :  { %610 = vmatprep.subr.bf16.mxu0 %v866_v0  ;;  %v191_v38 = vld [vmem:[#allocation7 + $0x58] sm:$0xff]  ;;  %v623_v39 = vpack.c.bf16 %v99_v35, %v98_v34  ;;  %v100_v40 = vld [vmem:[#allocation5 + $0x70] sm:$0xff]  ;;  %v192_v43 = vld [vmem:[#allocation7 + $0x60] sm:$0xff]  ;;  %v369_v23 = vand.u32 127, %v368_v22 }
  0x54   :  { %633 = vmatpush3.bf16.msra.mxu1 %v632_v18  ;;  %v101_v41 = vld [vmem:[#allocation5 + $0x78] sm:$0xff]  ;;  %v644_v42 = vpack.c.bf16 %v191_v38, %v190_v37  ;;  %v193_v44 = vld [vmem:[#allocation7 + $0x68] sm:$0xff]  ;;  %v194_v48 = vld [vmem:[#allocation7 + $0x70] sm:$0xff] }
  0x55   :  { %634 = vmatprep.subr.bf16.mxu1 %v866_v0  ;;  %v626_v45 = vpack.c.bf16 %v101_v41, %v100_v40  ;;  %v647_v46 = vpack.c.bf16 %v193_v44, %v192_v43  ;;  %v85_v47 = vld [vmem:[#allocation2] sm:$0xff]  ;;  %v274_v51 = vld [vmem:[#allocation8] sm:$0xff]  ;;  %v275_v52 = vld [vmem:[#allocation8 + $0x8] sm:$0xff]  ;;  %vm370_vm1 = vcmp.lt.s32.totalorder %v369_v23, 6  ;;  %v389_v29 = vcvt.s32.f32 %v369_v23 }
  0x56   :  { %612 = vmatpush3.bf16.msra.mxu0 %v611_v14  ;;  %v195_v49 = vld [vmem:[#allocation7 + $0x78] sm:$0xff]  ;;  %v276_v53 = vld [vmem:[#allocation8 + $0x10] sm:$0xff]  ;;  %v653_v54 = vpack.c.bf16 %v275_v52, %v274_v51  ;;  %v278_v57 = vld [vmem:[#allocation8 + $0x20] sm:$0xff] }
  0x57   :  { %613 = vmatprep.subr.bf16.mxu0 %v866_v0  ;;  %v650_v50 = vpack.c.bf16 %v195_v49, %v194_v48  ;;  %v277_v55 = vld [vmem:[#allocation8 + $0x18] sm:$0xff]  ;;  %v279_v58 = vld [vmem:[#allocation8 + $0x28] sm:$0xff]  ;;  %v280_v60 = vld [vmem:[#allocation8 + $0x30] sm:$0xff] }
  0x58   :  { %636 = vmatpush3.bf16.msra.mxu1 %v635_v24  ;;  %v656_v56 = vpack.c.bf16 %v277_v55, %v276_v53  ;;  %v659_v59 = vpack.c.bf16 %v279_v58, %v278_v57  ;;  %v281_v61 = vld [vmem:[#allocation8 + $0x38] sm:$0xff]  ;;  %v282_v63 = vld [vmem:[#allocation8 + $0x40] sm:$0xff]  ;;  %v283_v2 = vld [vmem:[#allocation8 + $0x48] sm:$0xff] }
  0x59   :  { %637 = vmatprep.subr.bf16.mxu1 %v866_v0  ;;  %v662_v62 = vpack.c.bf16 %v281_v61, %v280_v60  ;;  %v665_v3 = vpack.c.bf16 %v283_v2, %v282_v63  ;;  %v284_v4 = vld [vmem:[#allocation8 + $0x50] sm:$0xff]  ;;  %v285_v5 = vld [vmem:[#allocation8 + $0x58] sm:$0xff]  ;;  %v286_v7 = vld [vmem:[#allocation8 + $0x60] sm:$0xff] }
  0x5a   :  { %615 = vmatpush3.bf16.msra.mxu0 %v614_v21  ;;  %v668_v6 = vpack.c.bf16 %v285_v5, %v284_v4  ;;  %v287_v8 = vld [vmem:[#allocation8 + $0x68] sm:$0xff]  ;;  %v445_v10 = vld [vmem:[%s1065_s2] ss:$0 sm:$0xff]  ;;  %v288_v15 = vld [vmem:[#allocation8 + $0x70] sm:$0xff] }
  0x5b   :  { %616 = vmatprep.subr.bf16.mxu0 %v866_v0  ;;  %v671_v9 = vpack.c.bf16 %v287_v8, %v286_v7  ;;  %v289_v16 = vld [vmem:[#allocation8 + $0x78] sm:$0xff] }
  0x5c   :  { %639 = vmatpush3.bf16.msra.mxu1 %v638_v30  ;;  %v674_v17 = vpack.c.bf16 %v289_v16, %v288_v15  ;;  %v446_v18 = vld [vmem:[%s1067_s4] ss:$0 sm:$0xff]  ;;  %s869_s4 = smov [#allocation10]  }
  0x5d   :  { %640 = vmatprep.subr.bf16.mxu1 %v866_v0  ;;  %v447_v24 = vld [vmem:[%s1069_s6] ss:$0 sm:$0xff]  ;;  %s403_s6 = sshll.u32 %s869_s4, 4  ;;  %s404_s6 = int_to_ptr.vmem [resolvable:$true] %s403_s6 }
  0x5e   :  { %618 = vmatpush3.bf16.msra.mxu0 %v617_v27  ;;  %s784_s25 = scalar_lea.vmem %s404_s6, 128  ;;  %p789_p5 = scmp.lt.s32.totalorder %s404_s6, %s404_s6 }
  0x5f   :  { %619 = vmatprep.subr.bf16.mxu0 %v866_v0  ;;  %p785_p4 = scmp.ne.s32.totalorder %s404_s6, %s784_s25  ;;  %p790_p6 = scmp.lt.s32.totalorder %s784_s25, %s784_s25 }
  0x60   :  { %642 = vmatpush3.bf16.msra.mxu1 %v641_v36 }
  0x61   :  { %643 = vmatprep.subr.bf16.mxu1 %v866_v0  ;;  %p791_p7 = por %p790_p6, %p789_p5 }
  0x62   :  { %621 = vmatpush3.bf16.msra.mxu0 %v620_v33 }
  0x63   :  { %622 = vmatprep.subr.bf16.mxu0 %v866_v0  ;;  %p792_p8 = pnand %p791_p7, %p785_p4 }
  0x64   :  { %645 = vmatpush3.bf16.msra.mxu1 %v644_v42 }
  0x65   :  { %646 = vmatprep.subr.bf16.mxu1 %v866_v0 }
  0x66   :  { %624 = vmatpush3.bf16.msra.mxu0 %v623_v39 }
  0x67   :  { %625 = vmatprep.subr.bf16.mxu0 %v866_v0 }
  0x68   :  { %648 = vmatpush3.bf16.msra.mxu1 %v647_v46 }
  0x69   :  { %649 = vmatprep.subr.bf16.mxu1 %v866_v0 }
  0x6a   :  { %627 = vmatpush3.bf16.msra.mxu0 %v626_v45 }
  0x6b   :  { %652 = vmatprep.subr.bf16.mxu0 %v866_v0 }
  0x6c   :  { %651 = vmatpush3.bf16.msra.mxu1 %v650_v50 }
  0x6d   :  { %532 = vmatmul.mubr.f32.vlgmr.msra.gmra.mrb[0].mxu0 %v85_v47 }
  0x6e   :  { %601 = vmatprep.mubr.msk.f32.mxu0 %vm867_vm0, %v868_v1  ;;  %654 = vmatpush3.bf16.msra.mxu0 %v653_v54 }
  0x6f   :  { %655 = vmatprep.subr.bf16.mxu0 %v866_v0 }
  0x72   :  { %657 = vmatpush3.bf16.msra.mxu0 %v656_v56 }
  0x73   :  { %658 = vmatprep.subr.bf16.mxu0 %v866_v0 }
  0x76   :  { %660 = vmatpush3.bf16.msra.mxu0 %v659_v59 }
  0x77   :  { %661 = vmatprep.subr.bf16.mxu0 %v866_v0 }
  0x7a   :  { %663 = vmatpush3.bf16.msra.mxu0 %v662_v62 }
  0x7b   :  { %664 = vmatprep.subr.bf16.mxu0 %v866_v0 }
  0x7e   :  { %666 = vmatpush3.bf16.msra.mxu0 %v665_v3 }
  0x7f   :  { %667 = vmatprep.subr.bf16.mxu0 %v866_v0 }
  0x82   :  { %669 = vmatpush3.bf16.msra.mxu0 %v668_v6 }
  0x83   :  { %670 = vmatprep.subr.bf16.mxu0 %v866_v0 }
  0x86   :  { %672 = vmatpush3.bf16.msra.mxu0 %v671_v9 }
  0x87   :  { %673 = vmatprep.subr.bf16.mxu0 %v866_v0 }
  0x8a   :  { %675 = vmatpush3.bf16.msra.mxu0 %v674_v17 }
 0x140   :  { %v175_v11 = vpop.f32.mrb[0].mxu0 }
 0x141   :  { %v176_v12 = vadd.f32 %v445_v10, %v175_v11  ;;  %v533_v13 = vpop.f32.mrb[1].mxu0 }
 0x143   :  { %v179_v14 = vmax.f32 %v176_v12, 0.0 }
 0x145   :  { %567 = vmatmul.mubr.f32.vlgmr.msra.gmra.mrb[0].mxu1 %v179_v14 }
 0x218   :  { %v269_v19 = vpop.f32.mrb[0].mxu1 }
 0x219   :  { %v270_v20 = vadd.f32 %v446_v18, %v269_v19  ;;  %v568_v0 = vpop.f32.mrb[1].mxu1 }
 0x21b   :  { %v273_v21 = vmax.f32 %v270_v20, 0.0 }
 0x21d   :  { %602 = vmatmul.mubr.f32.vlgmr.msra.gmra.mrb[2].mxu0 %v273_v21 }
 0x2f0   :  { %v363_v25 = vpop.f32.mrb[2].mxu0 }
 0x2f1   :  { %v364_v26 = vadd.f32 %v447_v24, %v363_v25  ;;  %v603_v27 = vpop.f32.mrb[3].mxu0 }
 0x2f3   :  { %367 = vst [vmem:[#allocation10] sm:$0xff] %v364_v26  ;;  %v371_v28 = vsel %vm370_vm1, %v364_v26, -1e+30 }
 0x2f4   :  { %372 = vmax.xlane.f32.xlu0 %v371_v28 }
 0x381   :  { %v373_v30 = vpop.xlane.xlu0 %372 }
 0x382   :  { %v374_v31 = vsub.f32 %v371_v28, %v373_v30  ;;  %vm390_vm2 = vcmp.eq.f32.partialorder %v371_v28, %v373_v30 }
 0x383   :  { %v391_v32 = vsel %vm390_vm2, %v389_v29, 128.0 }
 0x384   :  { %v375_v33 = vmul.f32 1.442695, %v374_v31  ;;  %392 = vmin.xlane.f32.xlu1 %v391_v32 }
 0x386   :  { %690 = vpow2.f32 %v375_v33 }
 0x390   :  { %v691_v34 = vpop.eup %690 }
 0x391   :  { %v377_v35 = vsel %vm370_vm1, %v691_v34, 0.0 }
 0x392   :  { %378 = vadd.xlane.f32.xlu0 %v377_v35 }
 0x393   :  { %795 = shalt.err (!%p792_p8)
}
 0x394   :  { %s796_s29 = scalar_lea.hbm %s1070_s7, 128 }
 0x395   :  { %p797_p9 = scmp.ne.s32.totalorder %s1070_s7, %s796_s29  ;;  %p800_p10 = scmp.lt.u32.totalorder %s796_s29, %s1070_s7 }
 0x397   :  { %p802_p11 = pnand %p800_p10, %p797_p9 }
 0x399   :  { %805 = shalt.err (!%p802_p11)
}
 0x39a   :  { %406 = dma.vmem_to_hbm [thread:$0]  %s404_s6, 128, %s1070_s7, [#allocation4]   ;;  %vm395_vm3 = vcmask 7168  }
 0x39b   :  { %s870_s18 = smov [#allocation11]  }
 0x39c   :  { %s413_s1 = sshll.u32 %s870_s18, 4  ;;  %s414_s1 = int_to_ptr.vmem [resolvable:$true] %s413_s1 }
 0x39d   :  { %s806_s14 = scalar_lea.vmem %s414_s1, 128  ;;  %p811_p13 = scmp.lt.s32.totalorder %s414_s1, %s414_s1 }
 0x39e   :  { %p807_p12 = scmp.ne.s32.totalorder %s414_s1, %s806_s14  ;;  %p812_p0 = scmp.lt.s32.totalorder %s806_s14, %s806_s14 }
 0x3a0   :  { %p813_p1 = por %p812_p0, %p811_p13 }
 0x3a2   :  { %p814_p2 = pnand %p813_p1, %p807_p12 }
 0x411   :  { %v393_v36 = vpop.xlane.xlu1 %392 }
 0x412   :  { %v676_v37 = vtrunc.f32 %v393_v36 }
 0x414   :  { %v677_v38 = vcvt.f32.s32 %v676_v37 }
 0x416   :  { %396 = vst.msk [vmem:[%s1073_s10] sm:$0xff] %vm395_vm3, %v677_v38 }
 0x41f   :  { %v379_v39 = vpop.xlane.xlu0 %378 }
 0x420   :  { %692 = vrcp.f32 %v379_v39 }
 0x42a   :  { %v693_v40 = vpop.eup %692 }
 0x42b   :  { %v381_v41 = vmul.f32 %v693_v40, %v377_v35 }
 0x42d   :  { %382 = vst [vmem:[#allocation11] sm:$0xff] %v381_v41  ;;  %vm383_vm4 = vcmp.eq.f32.partialorder %v381_v41, 0.0 }
 0x42e   :  { %817 = shalt.err (!%p814_p2)
}
 0x42f   :  { %s818_s10 = scalar_lea.hbm %s1071_s8, 128 }
 0x430   :  { %p819_p3 = scmp.ne.s32.totalorder %s1071_s8, %s818_s10  ;;  %p822_p4 = scmp.lt.u32.totalorder %s818_s10, %s1071_s8 }
 0x432   :  { %p824_p5 = pnand %p822_p4, %p819_p3 }
 0x434   :  { %827 = shalt.err (!%p824_p5)
}
 0x435   :  { %416 = dma.vmem_to_hbm [thread:$0]  %s414_s1, 128, %s1071_s8, [#allocation12]   ;;  %v384_v42 = vsel %vm383_vm4, 1e-06, %v868_v1 }
 0x436   :  { %v385_v43 = vadd.f32 %v384_v42, %v381_v41  ;;  %s871_s21 = smov [#allocation13]  }
 0x437   :  { %s423_s2 = sshll.u32 %s871_s21, 4  ;;  %s424_s2 = int_to_ptr.vmem [resolvable:$true] %s423_s2 }
 0x438   :  { %694 = vlog2.f32 %v385_v43  ;;  %s828_s22 = scalar_lea.vmem %s424_s2, 128  ;;  %p833_p7 = scmp.lt.s32.totalorder %s424_s2, %s424_s2 }
 0x439   :  { %p829_p6 = scmp.ne.s32.totalorder %s424_s2, %s828_s22  ;;  %p834_p8 = scmp.lt.s32.totalorder %s828_s22, %s828_s22 }
 0x43b   :  { %p835_p9 = por %p834_p8, %p833_p7 }
 0x43d   :  { %p836_p10 = pnand %p835_p9, %p829_p6 }
 0x442   :  { %v695_v44 = vpop.eup %694 }
 0x443   :  { %v387_v45 = vmul.f32 0.6931472, %v695_v44 }
 0x445   :  { %388 = vst [vmem:[#allocation13] sm:$0xff] %v387_v45 }
 0x446   :  { %839 = shalt.err (!%p836_p10)
}
 0x447   :  { %s840_s8 = scalar_lea.hbm %s1072_s9, 128 }
 0x448   :  { %p841_p11 = scmp.ne.s32.totalorder %s1072_s9, %s840_s8  ;;  %p844_p12 = scmp.lt.u32.totalorder %s840_s8, %s1072_s9 }
 0x44a   :  { %p846_p13 = pnand %p844_p12, %p841_p11 }
 0x44c   :  { %849 = shalt.err (!%p846_p13)
}
 0x44d   :  { %426 = dma.vmem_to_hbm [thread:$0]  %s424_s2, 128, %s1072_s9, [#allocation12]  }
 0x44e   :  { %856 = dma.done.wait [#allocation4], 128  }
 0x44f   :  { %857 = vsyncadd [#allocation4], 4294967168 }
 0x450   :  { %858 = dma.done.wait [#allocation12], 256  }
 0x451   :  { %859 = vsyncadd [#allocation12], 4294967040 }
 0x452   :  { %440 = vsyncpa [#allocation3], 1 }
 0x453   :  { %441 = vsyncpa [#allocation6], 1 }
 0x454   :  { %442 = vsyncpa [#allocation9], 1 }
 0x455   :  { %443 = vsyncpa [#allocation4], 1 }
 0x456   :  { %444 = vsyncpa [#allocation12], 1 }

</bundles_post_ra>
